<compile_context>
chip_gen: v7x
topology: tpu7x:2x2x1
jax: 0.10.0
libtpu: 0.0.40
codegen_flags: <defaults>
</compile_context>

<pallas_src>
import functools

import jax
import jax.numpy as jnp
from jax.experimental import pallas as pl
from jax.experimental.pallas import tpu as pltpu


def _round_up(x: int, m: int) -> int:
    return -(-x // m) * m


# Cap on the d_in tile: keeps the double-buffered x tile and the per-step w1
# block small enough for v7x's 64 MiB VMEM even for very wide inputs, while
# small d_in (<= cap) stays a single, fully weight-resident K step.
_K_TILE_MAX = 4096


def _k_tiling(d_in: int):
    """Returns (tile_k, padded_d_in)."""
    if d_in <= _K_TILE_MAX:
        return d_in, d_in                      # full-dim block, no pad needed
    return _K_TILE_MAX, _round_up(d_in, _K_TILE_MAX)


def _choose_tile_b(batch: int) -> int:
    if batch <= 128:
        return _round_up(max(batch, 1), 8)     # single small tile, 8-row aligned
    # >= 2 grid steps keeps both v7x TensorCores busy; 512-row cap is the
    # measured HBM-roofline sweet spot on v5e/v6e.
    half = -(-batch // 2)
    return min(512, max(128, _round_up(half, 128)))


def _encoder_kernel(x_ref, w1_ref, b1_ref, w2_ref, b2_ref, wh_ref, bh_ref,
                    out_ref, acc_ref, *, latent_dim):
    k = pl.program_id(1)

    @pl.when(k == 0)
    def _():
        acc_ref[...] = jnp.zeros_like(acc_ref)

    # fc1 partial product for this d_in tile (bf16 into the MXU, f32 accumulate).
    acc_ref[...] += jnp.dot(x_ref[...].astype(jnp.bfloat16), w1_ref[...],
                            preferred_element_type=jnp.float32)

    @pl.when(k == pl.num_programs(1) - 1)
    def _():
        # fc1 bias + SiLU (f32 elementwise on VPU/EUP).
        h1 = acc_ref[...] + b1_ref[...]
        h1 = h1 * jax.nn.sigmoid(h1)

        # fc2 + SiLU
        h2 = jnp.dot(h1.astype(jnp.bfloat16), w2_ref[...],
                     preferred_element_type=jnp.float32) + b2_ref[...]
        h2 = h2 * jax.nn.sigmoid(h2)

        # fused heads: columns [0, L) are mu, [L, 2L) are log-var, rest zero pad.
        head = jnp.dot(h2.astype(jnp.bfloat16), wh_ref[...],
                       preferred_element_type=jnp.float32) + bh_ref[...]
        col = jax.lax.broadcasted_iota(jnp.int32, head.shape, 1)
        is_var = col >= latent_dim
        # exp only on the variance lanes; mask before exp so large mu logits on
        # the discarded lanes can't produce inf.
        head = jnp.where(is_var, jnp.exp(jnp.where(is_var, head, 0.0)), head)
        out_ref[...] = head.astype(out_ref.dtype)


def prepare_params(params):
    """One-time conversion of the (transposed-)Linear params into kernel layout:
    bf16 weights, d_in padded for K tiling, fused lane-dense mean/var head."""
    w1, b1, w2, b2, wm, bm, wv, bv = params
    latent_dim = wm.shape[1]

    d_in = w1.shape[0]
    _, d_pad = _k_tiling(d_in)
    if d_pad != d_in:
        w1 = jnp.pad(w1, ((0, d_pad - d_in), (0, 0)))   # zero rows: no-op in dot

    w_head = jnp.concatenate([wm, wv], axis=1)          # (128, 2L)
    b_head = jnp.concatenate([bm, bv], axis=1)          # (1, 2L)
    head_pad = max(128, _round_up(2 * latent_dim, 128))
    extra = head_pad - 2 * latent_dim
    if extra:
        w_head = jnp.pad(w_head, ((0, 0), (0, extra)))
        b_head = jnp.pad(b_head, ((0, 0), (0, extra)))

    kernel_params = (
        w1.astype(jnp.bfloat16), b1.astype(jnp.float32),
        w2.astype(jnp.bfloat16), b2.astype(jnp.float32),
        w_head.astype(jnp.bfloat16), b_head.astype(jnp.float32),
    )
    return kernel_params, latent_dim


@functools.partial(jax.jit, static_argnums=(2,))
def variational_encoder(x, kernel_params, latent_dim):
    """x: (B, ch, shape, shape).  Returns (mu, sigma), each (B, latent_dim) f32."""
    w1, b1, w2, b2, wh, bh = kernel_params
    B = x.shape[0]

    # flatten NCHW -> (B, ch*shape*shape); row-major == torch.flatten(start_dim=1).
    x_flat = x.reshape(B, -1)
    # Stream x at its native width if it is already f32/bf16 (a standalone
    # downcast pass would add a full extra HBM read+write and net out negative).
    if x_flat.dtype not in (jnp.float32, jnp.bfloat16):
        x_flat = x_flat.astype(jnp.float32)

    d_in = x_flat.shape[1]
    tile_k, d_pad = _k_tiling(d_in)
    assert w1.shape[0] == d_pad, "kernel_params must come from prepare_params()"

    h1_dim, h2_dim = w1.shape[1], w2.shape[1]           # 256, 128
    head_pad = wh.shape[1]

    tile_b = _choose_tile_b(B)
    b_pad = _round_up(B, tile_b)

    pad_rows, pad_cols = b_pad - B, d_pad - d_in
    if pad_rows or pad_cols:
        x_flat = jnp.pad(x_flat, ((0, pad_rows), (0, pad_cols)))

    grid = (b_pad // tile_b, d_pad // tile_k)

    x_item = x_flat.dtype.itemsize
    out_dtype = jnp.bfloat16                            # halves the lane-padded writeback
    out_item = 2

    # Explicit VMEM budget: 2 x-buffers + (default double-buffered) weights/biases
    # + f32 fc1 accumulator + 2 output buffers, with headroom for Mosaic scratch.
    vmem_need = (
        2 * tile_b * tile_k * x_item
        + 2 * (tile_k * h1_dim + h1_dim * h2_dim + h2_dim * head_pad) * 2
        + 2 * (h1_dim + h2_dim + head_pad) * 4
        + 2 * tile_b * head_pad * out_item
        + tile_b * h1_dim * 4
    )
    vmem_limit = int(min(64 << 20, max(16 << 20, int(1.5 * vmem_need) + (2 << 20))))

    cost = pl.CostEstimate(
        flops=2 * b_pad * (d_pad * h1_dim + h1_dim * h2_dim + h2_dim * head_pad),
        transcendentals=b_pad * (h1_dim + h2_dim + head_pad),
        bytes_accessed=(x_flat.size * x_item
                        + (w1.size + w2.size + wh.size) * 2
                        + (b1.size + b2.size + bh.size) * 4
                        + b_pad * head_pad * out_item),
    )

    out = pl.pallas_call(
        functools.partial(_encoder_kernel, latent_dim=latent_dim),
        out_shape=jax.ShapeDtypeStruct((b_pad, head_pad), out_dtype),
        grid=grid,
        in_specs=[
            # x: tiled over (batch, d_in); pipelined / double-buffered by Pallas.
            pl.BlockSpec((tile_b, tile_k), lambda i, k: (i, k)),
            # fc1 weight: tiled over d_in only.
            pl.BlockSpec((tile_k, h1_dim), lambda i, k: (k, 0)),
            # remaining params: grid-invariant, DMA'd once and kept resident in
            # VMEM (default double-buffering costs <1 MiB thanks to the K cap).
            pl.BlockSpec((1, h1_dim), lambda i, k: (0, 0)),
            pl.BlockSpec((h1_dim, h2_dim), lambda i, k: (0, 0)),
            pl.BlockSpec((1, h2_dim), lambda i, k: (0, 0)),
            pl.BlockSpec((h2_dim, head_pad), lambda i, k: (0, 0)),
            pl.BlockSpec((1, head_pad), lambda i, k: (0, 0)),
        ],
        out_specs=pl.BlockSpec((tile_b, head_pad), lambda i, k: (i, 0)),
        scratch_shapes=[pltpu.VMEM((tile_b, h1_dim), jnp.float32)],
        compiler_params=pltpu.CompilerParams(
            dimension_semantics=("parallel", "arbitrary"),  # batch sharded on v7x megacore
            vmem_limit_bytes=vmem_limit,
        ),
        cost_estimate=cost,
    )(x_flat, w1, b1, w2, b2, wh, bh)

    mu = out[:B, :latent_dim].astype(jnp.float32)
    sigma = out[:B, latent_dim:2 * latent_dim].astype(jnp.float32)
    return mu, sigma


def init_params(key, latent_dim, shape, ch):
    """Deterministic init matching the PyTorch layer shapes.
    Weights stored transposed: (in_features, out_features); biases as (1, out)."""
    d_in = ch * shape ** 2
    dims = [(d_in, 256), (256, 128), (128, latent_dim), (128, latent_dim)]
    params = []
    for (fan_in, fan_out) in dims:
        key, kw, kb = jax.random.split(key, 3)
        bound = 1.0 / (fan_in ** 0.5)
        w = jax.random.uniform(kw, (fan_in, fan_out), jnp.float32, -bound, bound)
        b = jax.random.uniform(kb, (1, fan_out), jnp.float32, -bound, bound)
        params += [w, b]
    return tuple(params)


def _reference(x, params):
    """Pure-JAX f32 reference of the PyTorch forward (for tolerance checking)."""
    w1, b1, w2, b2, wm, bm, wv, bv = params
    h = x.reshape(x.shape[0], -1)
    h = jax.nn.silu(h @ w1 + b1)
    h = jax.nn.silu(h @ w2 + b2)
    return h @ wm + bm, jnp.exp(h @ wv + bv)


if __name__ == "__main__":
    B, ch, shape, latent_dim = 2, 4, 16, 8

    key = jax.random.PRNGKey(0)
    key, kx = jax.random.split(key)
    x = jax.random.normal(kx, (B, ch, shape, shape), jnp.float32)

    params = init_params(key, latent_dim, shape, ch)
    kernel_params, L = prepare_params(params)

    mu, sigma = variational_encoder(x, kernel_params, L)
    jax.block_until_ready((mu, sigma))

    assert mu.shape == (B, latent_dim) and sigma.shape == (B, latent_dim)
    assert bool(jnp.all(sigma > 0))
    assert bool(jnp.all(jnp.isfinite(mu))) and bool(jnp.all(jnp.isfinite(sigma)))

    # bf16 MXU inputs + bf16 output store => loose tolerance vs the f32 reference.
    mu_ref, sigma_ref = _reference(x, params)
    err = max(float(jnp.max(jnp.abs(mu - mu_ref))),
              float(jnp.max(jnp.abs(sigma - sigma_ref))))
    assert err < 0.1, f"kernel/reference mismatch: max abs err {err}"

    print("KERNEL_OK")
</pallas_src>

<mosaic_0001>
module attributes {stable_mosaic.version = 11 : i64} {
  func.func @_encoder_kernel(%arg0: i32, %arg1: i32, %arg2: memref<8x1024xf32, #tpu.memory_space<vmem>>, %arg3: memref<1024x256xbf16, #tpu.memory_space<vmem>>, %arg4: memref<1x256xf32, #tpu.memory_space<vmem>>, %arg5: memref<256x128xbf16, #tpu.memory_space<vmem>>, %arg6: memref<1x128xf32, #tpu.memory_space<vmem>>, %arg7: memref<128x128xbf16, #tpu.memory_space<vmem>>, %arg8: memref<1x128xf32, #tpu.memory_space<vmem>>, %arg9: memref<8x128xbf16, #tpu.memory_space<vmem>>, %arg10: memref<8x256xf32, #tpu.memory_space<vmem>>) attributes {dimension_semantics = [#tpu.dimension_semantics<parallel>, #tpu.dimension_semantics<arbitrary>], iteration_bounds = array<i64: 1, 1>, scalar_prefetch = 0 : i64, scratch_operands = 1 : i64, tpu.core_type = #tpu.core_type<tc>, window_params = [{transform_indices = @transform_0, window_bounds = array<i64: 8, 1024>}, {transform_indices = @transform_1, window_bounds = array<i64: 1024, 256>}, {pipeline_mode = #tpu.pipeline_mode<synchronous>, transform_indices = @transform_2, window_bounds = array<i64: 1, 256>}, {pipeline_mode = #tpu.pipeline_mode<synchronous>, transform_indices = @transform_3, window_bounds = array<i64: 256, 128>}, {pipeline_mode = #tpu.pipeline_mode<synchronous>, transform_indices = @transform_4, window_bounds = array<i64: 1, 128>}, {pipeline_mode = #tpu.pipeline_mode<synchronous>, transform_indices = @transform_5, window_bounds = array<i64: 128, 128>}, {pipeline_mode = #tpu.pipeline_mode<synchronous>, transform_indices = @transform_6, window_bounds = array<i64: 1, 128>}, {transform_indices = @transform_7, window_bounds = array<i64: 8, 128>}]} {
    %c0_i32 = arith.constant 0 : i32
    %0 = arith.cmpi eq, %arg1, %c0_i32 : i32
    %1 = arith.extui %0 : i1 to i32
    %c0_i32_0 = arith.constant 0 : i32
    %2 = arith.cmpi ne, %1, %c0_i32_0 : i32
    scf.if %2 {
      %cst_10 = arith.constant 0.000000e+00 : f32
      %13 = vector.broadcast %cst_10 : f32 to vector<8x256xf32>
      %c0_11 = arith.constant 0 : index
      %c0_12 = arith.constant 0 : index
      %14 = vector.load %arg10[%c0_11, %c0_12] : memref<8x256xf32, #tpu.memory_space<vmem>>, vector<8x256xf32>
      tpu.vector_store %arg10[%c0_11, %c0_12], %13 {strides = array<i32>} : memref<8x256xf32, #tpu.memory_space<vmem>>, vector<8x256xf32>,
    } else {
    }
    %c0 = arith.constant 0 : index
    %c0_1 = arith.constant 0 : index
    %3 = vector.load %arg10[%c0, %c0_1] : memref<8x256xf32, #tpu.memory_space<vmem>>, vector<8x256xf32>
    %c0_2 = arith.constant 0 : index
    %c0_3 = arith.constant 0 : index
    %4 = vector.load %arg2[%c0_2, %c0_3] : memref<8x1024xf32, #tpu.memory_space<vmem>>, vector<8x1024xf32>
    %5 = arith.truncf %4 : vector<8x1024xf32> to vector<8x1024xbf16>
    %c0_4 = arith.constant 0 : index
    %c0_5 = arith.constant 0 : index
    %6 = vector.load %arg3[%c0_4, %c0_5] : memref<1024x256xbf16, #tpu.memory_space<vmem>>, vector<1024x256xbf16>
    %cst = arith.constant dense<0.000000e+00> : vector<8x256xf32>
    %7 = tpu.matmul %5, %6, %cst {dimension_numbers = #tpu.dot_dimension_numbers<[1], [0], [0], [1], [0, 0, 1, 1], [], []>} : vector<8x1024xbf16>, vector<1024x256xbf16>, vector<8x256xf32> -> vector<8x256xf32>
    %8 = arith.addf %3, %7 : vector<8x256xf32>
    %c0_6 = arith.constant 0 : index
    %c0_7 = arith.constant 0 : index
    %9 = vector.load %arg10[%c0_6, %c0_7] : memref<8x256xf32, #tpu.memory_space<vmem>>, vector<8x256xf32>
    tpu.vector_store %arg10[%c0_6, %c0_7], %8 {strides = array<i32>} : memref<8x256xf32, #tpu.memory_space<vmem>>, vector<8x256xf32>,
    %c0_i32_8 = arith.constant 0 : i32
    %10 = arith.cmpi eq, %arg1, %c0_i32_8 : i32
    %11 = arith.extui %10 : i1 to i32
    %c0_i32_9 = arith.constant 0 : i32
    %12 = arith.cmpi ne, %11, %c0_i32_9 : i32
    scf.if %12 {
      %c0_10 = arith.constant 0 : index
      %c0_11 = arith.constant 0 : index
      %13 = vector.load %arg10[%c0_10, %c0_11] : memref<8x256xf32, #tpu.memory_space<vmem>>, vector<8x256xf32>
      %c0_12 = arith.constant 0 : index
      %c0_13 = arith.constant 0 : index
      %14 = vector.load %arg4[%c0_12, %c0_13] : memref<1x256xf32, #tpu.memory_space<vmem>>, vector<1x256xf32>
      %15 = vector.broadcast %14 : vector<1x256xf32> to vector<8x256xf32>
      %16 = arith.addf %13, %15 : vector<8x256xf32>
      %17 = arith.negf %16 : vector<8x256xf32>
      %18 = math.exp %17 : vector<8x256xf32>
      %cst_14 = arith.constant 1.000000e+00 : f32
      %19 = vector.broadcast %cst_14 : f32 to vector<8x256xf32>
      %20 = arith.addf %19, %18 : vector<8x256xf32>
      %21 = arith.divf %19, %20 : vector<8x256xf32>
      %22 = arith.mulf %16, %21 : vector<8x256xf32>
      %23 = arith.truncf %22 : vector<8x256xf32> to vector<8x256xbf16>
      %c0_15 = arith.constant 0 : index
      %c0_16 = arith.constant 0 : index
      %24 = vector.load %arg5[%c0_15, %c0_16] : memref<256x128xbf16, #tpu.memory_space<vmem>>, vector<256x128xbf16>
      %cst_17 = arith.constant dense<0.000000e+00> : vector<8x128xf32>
      %25 = tpu.matmul %23, %24, %cst_17 {dimension_numbers = #tpu.dot_dimension_numbers<[1], [0], [0], [1], [0, 0, 1, 1], [], []>} : vector<8x256xbf16>, vector<256x128xbf16>, vector<8x128xf32> -> vector<8x128xf32>
      %c0_18 = arith.constant 0 : index
      %c0_19 = arith.constant 0 : index
      %26 = vector.load %arg6[%c0_18, %c0_19] : memref<1x128xf32, #tpu.memory_space<vmem>>, vector<1x128xf32>
      %27 = vector.broadcast %26 : vector<1x128xf32> to vector<8x128xf32>
      %28 = arith.addf %25, %27 : vector<8x128xf32>
      %29 = arith.negf %28 : vector<8x128xf32>
      %30 = math.exp %29 : vector<8x128xf32>
      %cst_20 = arith.constant 1.000000e+00 : f32
      %31 = vector.broadcast %cst_20 : f32 to vector<8x128xf32>
      %32 = arith.addf %31, %30 : vector<8x128xf32>
      %33 = arith.divf %31, %32 : vector<8x128xf32>
      %34 = arith.mulf %28, %33 : vector<8x128xf32>
      %35 = arith.truncf %34 : vector<8x128xf32> to vector<8x128xbf16>
      %c0_21 = arith.constant 0 : index
      %c0_22 = arith.constant 0 : index
      %36 = vector.load %arg7[%c0_21, %c0_22] : memref<128x128xbf16, #tpu.memory_space<vmem>>, vector<128x128xbf16>
      %cst_23 = arith.constant dense<0.000000e+00> : vector<8x128xf32>
      %37 = tpu.matmul %35, %36, %cst_23 {dimension_numbers = #tpu.dot_dimension_numbers<[1], [0], [0], [1], [0, 0, 1, 1], [], []>} : vector<8x128xbf16>, vector<128x128xbf16>, vector<8x128xf32> -> vector<8x128xf32>
      %c0_24 = arith.constant 0 : index
      %c0_25 = arith.constant 0 : index
      %38 = vector.load %arg8[%c0_24, %c0_25] : memref<1x128xf32, #tpu.memory_space<vmem>>, vector<1x128xf32>
      %39 = vector.broadcast %38 : vector<1x128xf32> to vector<8x128xf32>
      %40 = arith.addf %37, %39 : vector<8x128xf32>
      %41 = tpu.iota {dimensions = array<i32: 1>} : vector<8x128xi32>
      %c8_i32 = arith.constant 8 : i32
      %42 = vector.broadcast %c8_i32 : i32 to vector<8x128xi32>
      %43 = arith.cmpi sge, %41, %42 : vector<8x128xi32>
      %cst_26 = arith.constant 0.000000e+00 : f32
      %44 = vector.broadcast %cst_26 : f32 to vector<8x128xf32>
      %45 = arith.select %43, %40, %44 : vector<8x128xi1>, vector<8x128xf32>
      %46 = math.exp %45 : vector<8x128xf32>
      %47 = arith.select %43, %46, %40 : vector<8x128xi1>, vector<8x128xf32>
      %48 = arith.truncf %47 : vector<8x128xf32> to vector<8x128xbf16>
      %c0_27 = arith.constant 0 : index
      %c0_28 = arith.constant 0 : index
      %49 = vector.load %arg9[%c0_27, %c0_28] : memref<8x128xbf16, #tpu.memory_space<vmem>>, vector<8x128xbf16>
      tpu.vector_store %arg9[%c0_27, %c0_28], %48 {strides = array<i32>} : memref<8x128xbf16, #tpu.memory_space<vmem>>, vector<8x128xbf16>,
    } else {
    }
    return
  }
  func.func @transform_0(%arg0: i32, %arg1: i32) -> (i32, i32) {
    %c0_i32 = arith.constant 0 : i32
    return %arg0, %arg1 : i32, i32
  }
  func.func @transform_1(%arg0: i32, %arg1: i32) -> (i32, i32) {
    %c0_i32 = arith.constant 0 : i32
    %c0_i32_0 = arith.constant 0 : i32
    return %arg1, %c0_i32 : i32, i32
  }
  func.func @transform_2(%arg0: i32, %arg1: i32) -> (i32, i32) {
    %c0_i32 = arith.constant 0 : i32
    %c0_i32_0 = arith.constant 0 : i32
    %c0_i32_1 = arith.constant 0 : i32
    return %c0_i32, %c0_i32_0 : i32, i32
  }
  func.func @transform_3(%arg0: i32, %arg1: i32) -> (i32, i32) {
    %c0_i32 = arith.constant 0 : i32
    %c0_i32_0 = arith.constant 0 : i32
    %c0_i32_1 = arith.constant 0 : i32
    return %c0_i32, %c0_i32_0 : i32, i32
  }
  func.func @transform_4(%arg0: i32, %arg1: i32) -> (i32, i32) {
    %c0_i32 = arith.constant 0 : i32
    %c0_i32_0 = arith.constant 0 : i32
    %c0_i32_1 = arith.constant 0 : i32
    return %c0_i32, %c0_i32_0 : i32, i32
  }
  func.func @transform_5(%arg0: i32, %arg1: i32) -> (i32, i32) {
    %c0_i32 = arith.constant 0 : i32
    %c0_i32_0 = arith.constant 0 : i32
    %c0_i32_1 = arith.constant 0 : i32
    return %c0_i32, %c0_i32_0 : i32, i32
  }
  func.func @transform_6(%arg0: i32, %arg1: i32) -> (i32, i32) {
    %c0_i32 = arith.constant 0 : i32
    %c0_i32_0 = arith.constant 0 : i32
    %c0_i32_1 = arith.constant 0 : i32
    return %c0_i32, %c0_i32_0 : i32, i32
  }
  func.func @transform_7(%arg0: i32, %arg1: i32) -> (i32, i32) {
    %c0_i32 = arith.constant 0 : i32
    %c0_i32_0 = arith.constant 0 : i32
    return %arg0, %c0_i32 : i32, i32
  }
}

</mosaic_0001>

<bundles_post_ra>
// kernel: variational_encoder.1
= control target key start
LH: loop header
LB: loop body
LE: loop exit
PB: predicated region body
PF: predicated region fallthrough
CT: control target
= control target key end

     0   :  { %12 = vsyncpa [#allocation4], 0  ;;  %s1811_s24 = smov [#allocation3]   ;;  %s1978_s0 = inlined_call_operand.vmem [shape: f32[8,1024], index: 0, kind: input, shape index: {}]   ;;  %s1979_s1 = inlined_call_operand.hbm [shape: bf16[1024,256], index: 1, kind: input, shape index: {}]   ;;  %s1980_s2 = inlined_call_operand.vmem [shape: f32[1,256], index: 2, kind: input, shape index: {}]   ;;  %s1981_s3 = inlined_call_operand.vmem [shape: bf16[256,128], index: 3, kind: input, shape index: {}]   ;;  %s1982_s4 = inlined_call_operand.vmem [shape: f32[1,128], index: 4, kind: input, shape index: {}]   ;;  %s1983_s5 = inlined_call_operand.vmem [shape: bf16[128,128], index: 5, kind: input, shape index: {}]   ;;  %s1984_s6 = inlined_call_operand.vmem [shape: f32[1,128], index: 6, kind: input, shape index: {}]   ;;  %s1985_s7 = inlined_call_operand.vmem [shape: bf16[8,128], index: 7, kind: output, shape index: {}]  }
   0x1   :  { %s20_s25 = sshll.u32 %s1811_s24, 4  ;;  %s1787_s28 = scalar_lea.hbm %s1979_s1, 16384  ;;  %s21_s25 = int_to_ptr.vmem [resolvable:$true] %s20_s25 }
   0x2   :  { %p1788_p0 = scmp.ne.s32.totalorder %s1979_s1, %s1787_s28  ;;  %p1791_p1 = scmp.lt.u32.totalorder %s1787_s28, %s1979_s1 }
   0x4   :  { %p1793_p2 = pnand %p1791_p1, %p1788_p0 }
   0x6   :  { %1796 = shalt.err (!%p1793_p2)
}
   0x7   :  { %s1797_s10 = scalar_lea.vmem %s21_s25, 16384  ;;  %p1802_p4 = scmp.lt.s32.totalorder %s21_s25, %s21_s25 }
   0x8   :  { %p1798_p3 = scmp.ne.s32.totalorder %s21_s25, %s1797_s10  ;;  %p1803_p5 = scmp.lt.s32.totalorder %s1797_s10, %s1797_s10 }
   0xa   :  { %p1804_p6 = por %p1803_p5, %p1802_p4 }
   0xc   :  { %p1805_p7 = pnand %p1804_p6, %p1798_p3 }
   0xe   :  { %1808 = shalt.err (!%p1805_p7)
}
   0xf   :  { %s1812_s11 = smov 128   ;;  %s1813_s12 = smov 8  }
  0x10   :  { %26 = dma.hbm_to_vmem [thread:$0]  %s1979_s1, 16384, %s21_s25, [#allocation4], %s1812_s11, %s1812_s11, %s1813_s12  }
  0x11   :  { %1809 = dma.done.wait [#allocation4], 16384  }
  0x12   :  { %1810 = vsyncadd [#allocation4], 4294950912  ;;  %v1557_v0 = vld [vmem:[#allocation3 + $0x4] ss:$8 sps:$4 sm:$0xff]   ;;  %v1561_v2 = vld [vmem:[#allocation3] ss:$8 sps:$4 sm:$0xff]  }
  0x13   :  { %v1559_v1 = vld [vmem:[#allocation3 + $0x104] ss:$8 sps:$4 sm:$0xff]   ;;  %833 = vmatprep.subr.bf16.mxu0 %v1557_v0  ;;  %v1562_v3 = vld [vmem:[#allocation3 + $0x100] ss:$8 sps:$4 sm:$0xff]   ;;  %v1563_v4 = vld [vmem:[#allocation3 + $0x14] ss:$8 sps:$4 sm:$0xff]  }
  0x14   :  { %874 = vmatprep.subr.bf16.mxu1 %v1559_v1  ;;  %834 = vmatpush1.bf16.msra.mxu0 %v1561_v2  ;;  %v1565_v5 = vld [vmem:[#allocation3 + $0x114] ss:$8 sps:$4 sm:$0xff]   ;;  %v1567_v6 = vld [vmem:[#allocation3 + $0x10] ss:$8 sps:$4 sm:$0xff]   ;;  %v1569_v8 = vld [vmem:[#allocation3 + $0x24] ss:$8 sps:$4 sm:$0xff]  }
  0x15   :  { %875 = vmatpush1.bf16.msra.mxu1 %v1562_v3  ;;  %835 = vmatprep.subr.bf16.mxu0 %v1563_v4  ;;  %v1568_v7 = vld [vmem:[#allocation3 + $0x110] ss:$8 sps:$4 sm:$0xff]   ;;  %v1571_v9 = vld [vmem:[#allocation3 + $0x124] ss:$8 sps:$4 sm:$0xff]   ;;  %v1573_v10 = vld [vmem:[#allocation3 + $0x20] ss:$8 sps:$4 sm:$0xff]  }
  0x16   :  { %876 = vmatprep.subr.bf16.mxu1 %v1565_v5  ;;  %v1574_v11 = vld [vmem:[#allocation3 + $0x120] ss:$8 sps:$4 sm:$0xff]   ;;  %v1575_v12 = vld [vmem:[#allocation3 + $0x34] ss:$8 sps:$4 sm:$0xff]   ;;  %v1579_v14 = vld [vmem:[#allocation3 + $0x30] ss:$8 sps:$4 sm:$0xff]  }
  0x17   :  { %v1577_v13 = vld [vmem:[#allocation3 + $0x134] ss:$8 sps:$4 sm:$0xff]   ;;  %v1580_v15 = vld [vmem:[#allocation3 + $0x130] ss:$8 sps:$4 sm:$0xff]   ;;  %v1581_v16 = vld [vmem:[#allocation3 + $0x44] ss:$8 sps:$4 sm:$0xff]  }
  0x18   :  { %836 = vmatpush1.bf16.msra.mxu0 %v1567_v6  ;;  %v1583_v17 = vld [vmem:[#allocation3 + $0x144] ss:$8 sps:$4 sm:$0xff]   ;;  %v1585_v18 = vld [vmem:[#allocation3 + $0x40] ss:$8 sps:$4 sm:$0xff]   ;;  %v1587_v20 = vld [vmem:[#allocation3 + $0x54] ss:$8 sps:$4 sm:$0xff]  }
  0x19   :  { %877 = vmatpush1.bf16.msra.mxu1 %v1568_v7  ;;  %837 = vmatprep.subr.bf16.mxu0 %v1569_v8  ;;  %v1586_v19 = vld [vmem:[#allocation3 + $0x140] ss:$8 sps:$4 sm:$0xff]   ;;  %v1589_v21 = vld [vmem:[#allocation3 + $0x154] ss:$8 sps:$4 sm:$0xff]   ;;  %v1591_v22 = vld [vmem:[#allocation3 + $0x50] ss:$8 sps:$4 sm:$0xff]  }
  0x1a   :  { %878 = vmatprep.subr.bf16.mxu1 %v1571_v9  ;;  %v1592_v23 = vld [vmem:[#allocation3 + $0x150] ss:$8 sps:$4 sm:$0xff]   ;;  %v1593_v24 = vld [vmem:[#allocation3 + $0x64] ss:$8 sps:$4 sm:$0xff]   ;;  %v1597_v26 = vld [vmem:[#allocation3 + $0x60] ss:$8 sps:$4 sm:$0xff]  }
  0x1b   :  { %v1595_v25 = vld [vmem:[#allocation3 + $0x164] ss:$8 sps:$4 sm:$0xff]   ;;  %v1598_v27 = vld [vmem:[#allocation3 + $0x160] ss:$8 sps:$4 sm:$0xff]   ;;  %v1599_v28 = vld [vmem:[#allocation3 + $0x74] ss:$8 sps:$4 sm:$0xff]  }
  0x1c   :  { %838 = vmatpush1.bf16.msra.mxu0 %v1573_v10  ;;  %v1601_v29 = vld [vmem:[#allocation3 + $0x174] ss:$8 sps:$4 sm:$0xff]   ;;  %v1603_v30 = vld [vmem:[#allocation3 + $0x70] ss:$8 sps:$4 sm:$0xff]   ;;  %v1605_v32 = vld [vmem:[#allocation3 + $0x84] ss:$8 sps:$4 sm:$0xff]  }
  0x1d   :  { %879 = vmatpush1.bf16.msra.mxu1 %v1574_v11  ;;  %839 = vmatprep.subr.bf16.mxu0 %v1575_v12  ;;  %v1604_v31 = vld [vmem:[#allocation3 + $0x170] ss:$8 sps:$4 sm:$0xff]   ;;  %v1607_v33 = vld [vmem:[#allocation3 + $0x184] ss:$8 sps:$4 sm:$0xff]   ;;  %v1609_v34 = vld [vmem:[#allocation3 + $0x80] ss:$8 sps:$4 sm:$0xff]  }
  0x1e   :  { %880 = vmatprep.subr.bf16.mxu1 %v1577_v13  ;;  %v1610_v35 = vld [vmem:[#allocation3 + $0x180] ss:$8 sps:$4 sm:$0xff]   ;;  %v1611_v36 = vld [vmem:[#allocation3 + $0x94] ss:$8 sps:$4 sm:$0xff]   ;;  %v1615_v38 = vld [vmem:[#allocation3 + $0x90] ss:$8 sps:$4 sm:$0xff]  }
  0x1f   :  { %v1613_v37 = vld [vmem:[#allocation3 + $0x194] ss:$8 sps:$4 sm:$0xff]   ;;  %v1616_v39 = vld [vmem:[#allocation3 + $0x190] ss:$8 sps:$4 sm:$0xff]   ;;  %v1617_v40 = vld [vmem:[#allocation3 + $0xa4] ss:$8 sps:$4 sm:$0xff]  }
  0x20   :  { %840 = vmatpush1.bf16.msra.mxu0 %v1579_v14  ;;  %v1619_v41 = vld [vmem:[#allocation3 + $0x1a4] ss:$8 sps:$4 sm:$0xff]   ;;  %v1621_v42 = vld [vmem:[#allocation3 + $0xa0] ss:$8 sps:$4 sm:$0xff]   ;;  %v1623_v44 = vld [vmem:[#allocation3 + $0xb4] ss:$8 sps:$4 sm:$0xff]  }
  0x21   :  { %881 = vmatpush1.bf16.msra.mxu1 %v1580_v15  ;;  %841 = vmatprep.subr.bf16.mxu0 %v1581_v16  ;;  %v1622_v43 = vld [vmem:[#allocation3 + $0x1a0] ss:$8 sps:$4 sm:$0xff]   ;;  %v1625_v45 = vld [vmem:[#allocation3 + $0x1b4] ss:$8 sps:$4 sm:$0xff]   ;;  %v1627_v47 = vld [vmem:[#allocation3 + $0xb0] ss:$8 sps:$4 sm:$0xff]  }
  0x22   :  { %882 = vmatprep.subr.bf16.mxu1 %v1583_v17  ;;  %v50_v46 = vld [vmem:[%s1978_s0 + $0x8] sm:$0xff]  ;;  %v1628_v48 = vld [vmem:[#allocation3 + $0x1b0] ss:$8 sps:$4 sm:$0xff]   ;;  %v1635_v56 = vld [vmem:[#allocation3 + $0xd4] ss:$8 sps:$4 sm:$0xff]   ;;  %vm1815_vm0 = vmmov 0  }
  0x23   :  { %v58_v49 = vpack.c.bf16 %v50_v46, %v50_v46  ;;  %v52_v50 = vld [vmem:[%s1978_s0 + $0x18] sm:$0xff]  ;;  %v1629_v51 = vld [vmem:[#allocation3 + $0xc4] ss:$8 sps:$4 sm:$0xff]   ;;  %v1633_v54 = vld [vmem:[#allocation3 + $0xc0] ss:$8 sps:$4 sm:$0xff]  }
  0x24   :  { %842 = vmatpush1.bf16.msra.mxu0 %v1585_v18  ;;  %v60_v52 = vpack.c.bf16 %v52_v50, %v52_v50  ;;  %v1631_v53 = vld [vmem:[#allocation3 + $0x1c4] ss:$8 sps:$4 sm:$0xff]   ;;  %v1634_v55 = vld [vmem:[#allocation3 + $0x1c0] ss:$8 sps:$4 sm:$0xff]   ;;  %v1637_v57 = vld [vmem:[#allocation3 + $0x1d4] ss:$8 sps:$4 sm:$0xff]  }
  0x25   :  { %883 = vmatpush1.bf16.msra.mxu1 %v1586_v19  ;;  %843 = vmatprep.subr.bf16.mxu0 %v1587_v20  ;;  %v1639_v58 = vld [vmem:[#allocation3 + $0xd0] ss:$8 sps:$4 sm:$0xff]   ;;  %v1641_v60 = vld [vmem:[#allocation3 + $0xe4] ss:$8 sps:$4 sm:$0xff]   ;;  %v1645_v62 = vld [vmem:[#allocation3 + $0xe0] ss:$8 sps:$4 sm:$0xff]  }
  0x26   :  { %884 = vmatprep.subr.bf16.mxu1 %v1589_v21  ;;  %865 = vmatprep.mubr.bf16.mxu0 %v58_v49  ;;  %v1640_v59 = vld [vmem:[#allocation3 + $0x1d0] ss:$8 sps:$4 sm:$0xff]   ;;  %v1643_v61 = vld [vmem:[#allocation3 + $0x1e4] ss:$8 sps:$4 sm:$0xff]   ;;  %v1646_v63 = vld [vmem:[#allocation3 + $0x1e0] ss:$8 sps:$4 sm:$0xff]  }
  0x27   :  { %906 = vmatprep.mubr.bf16.mxu1 %v60_v52  ;;  %v1647_v0 = vld [vmem:[#allocation3 + $0xf4] ss:$8 sps:$4 sm:$0xff]   ;;  %v1651_v2 = vld [vmem:[#allocation3 + $0xf0] ss:$8 sps:$4 sm:$0xff]   ;;  %v49_v4 = vld [vmem:[%s1978_s0] sm:$0xff] }
  0x28   :  { %844 = vmatpush1.bf16.msra.mxu0 %v1591_v22  ;;  %v1649_v1 = vld [vmem:[#allocation3 + $0x1f4] ss:$8 sps:$4 sm:$0xff]   ;;  %v1652_v3 = vld [vmem:[#allocation3 + $0x1f0] ss:$8 sps:$4 sm:$0xff]   ;;  %v1655_v6 = vld [vmem:[#allocation3 + $0x204] ss:$8 sps:$4 sm:$0xff]   ;;  %v57_v8 = vpack.c.bf16 %v49_v4, %v49_v4 }
  0x29   :  { %885 = vmatpush1.bf16.msra.mxu1 %v1592_v23  ;;  %845 = vmatprep.subr.bf16.mxu0 %v1593_v24  ;;  %v51_v5 = vld [vmem:[%s1978_s0 + $0x10] sm:$0xff]  ;;  %v1658_v7 = vld [vmem:[#allocation3 + $0x304] ss:$8 sps:$4 sm:$0xff]   ;;  %v1653_v10 = vld [vmem:[#allocation3 + $0x200] ss:$8 sps:$4 sm:$0xff]  }
  0x2a   :  { %886 = vmatprep.subr.bf16.mxu1 %v1595_v25  ;;  %v59_v9 = vpack.c.bf16 %v51_v5, %v51_v5  ;;  %v1656_v11 = vld [vmem:[#allocation3 + $0x300] ss:$8 sps:$4 sm:$0xff]   ;;  %v1661_v12 = vld [vmem:[#allocation3 + $0x214] ss:$8 sps:$4 sm:$0xff]   ;;  %v1659_v14 = vld [vmem:[#allocation3 + $0x210] ss:$8 sps:$4 sm:$0xff]  }
  0x2b   :  { %v1664_v13 = vld [vmem:[#allocation3 + $0x314] ss:$8 sps:$4 sm:$0xff]   ;;  %v1662_v15 = vld [vmem:[#allocation3 + $0x310] ss:$8 sps:$4 sm:$0xff]   ;;  %v1667_v16 = vld [vmem:[#allocation3 + $0x224] ss:$8 sps:$4 sm:$0xff]  }
  0x2c   :  { %846 = vmatpush1.bf16.msra.mxu0 %v1597_v26  ;;  %v1670_v17 = vld [vmem:[#allocation3 + $0x324] ss:$8 sps:$4 sm:$0xff]   ;;  %v1665_v18 = vld [vmem:[#allocation3 + $0x220] ss:$8 sps:$4 sm:$0xff]   ;;  %v1673_v20 = vld [vmem:[#allocation3 + $0x234] ss:$8 sps:$4 sm:$0xff]  }
  0x2d   :  { %887 = vmatpush1.bf16.msra.mxu1 %v1598_v27  ;;  %847 = vmatprep.subr.bf16.mxu0 %v1599_v28  ;;  %v1668_v19 = vld [vmem:[#allocation3 + $0x320] ss:$8 sps:$4 sm:$0xff]   ;;  %v1676_v21 = vld [vmem:[#allocation3 + $0x334] ss:$8 sps:$4 sm:$0xff]   ;;  %v1671_v22 = vld [vmem:[#allocation3 + $0x230] ss:$8 sps:$4 sm:$0xff]  }
  0x2e   :  { %888 = vmatprep.subr.bf16.mxu1 %v1601_v29  ;;  %v1674_v23 = vld [vmem:[#allocation3 + $0x330] ss:$8 sps:$4 sm:$0xff]   ;;  %v1679_v24 = vld [vmem:[#allocation3 + $0x244] ss:$8 sps:$4 sm:$0xff]   ;;  %v1677_v26 = vld [vmem:[#allocation3 + $0x240] ss:$8 sps:$4 sm:$0xff]  }
  0x2f   :  { %v1682_v25 = vld [vmem:[#allocation3 + $0x344] ss:$8 sps:$4 sm:$0xff]   ;;  %v1680_v27 = vld [vmem:[#allocation3 + $0x340] ss:$8 sps:$4 sm:$0xff]   ;;  %v1685_v28 = vld [vmem:[#allocation3 + $0x254] ss:$8 sps:$4 sm:$0xff]  }
  0x30   :  { %848 = vmatpush1.bf16.msra.mxu0 %v1603_v30  ;;  %v1688_v29 = vld [vmem:[#allocation3 + $0x354] ss:$8 sps:$4 sm:$0xff]   ;;  %v1683_v30 = vld [vmem:[#allocation3 + $0x250] ss:$8 sps:$4 sm:$0xff]   ;;  %v1701_v46 = vld [vmem:[#allocation3 + $0x280] ss:$8 sps:$4 sm:$0xff]  }
  0x31   :  { %889 = vmatpush1.bf16.msra.mxu1 %v1604_v31  ;;  %849 = vmatprep.subr.bf16.mxu0 %v1605_v32  ;;  %v1686_v31 = vld [vmem:[#allocation3 + $0x350] ss:$8 sps:$4 sm:$0xff]   ;;  %v1691_v32 = vld [vmem:[#allocation3 + $0x264] ss:$8 sps:$4 sm:$0xff]   ;;  %v1712_v49 = vld [vmem:[#allocation3 + $0x394] ss:$8 sps:$4 sm:$0xff]  }
  0x32   :  { %890 = vmatprep.subr.bf16.mxu1 %v1607_v33  ;;  %v1694_v33 = vld [vmem:[#allocation3 + $0x364] ss:$8 sps:$4 sm:$0xff]   ;;  %v1707_v50 = vld [vmem:[#allocation3 + $0x290] ss:$8 sps:$4 sm:$0xff]  }
  0x33   :  { %v1715_v52 = vld [vmem:[#allocation3 + $0x2a4] ss:$8 sps:$4 sm:$0xff]  }
  0x34   :  { %850 = vmatpush1.bf16.msra.mxu0 %v1609_v34  ;;  %v1689_v34 = vld [vmem:[#allocation3 + $0x260] ss:$8 sps:$4 sm:$0xff]   ;;  %v1739_v4 = vld [vmem:[#allocation3 + $0x2e4] ss:$8 sps:$4 sm:$0xff]  }
  0x35   :  { %891 = vmatpush1.bf16.msra.mxu1 %v1610_v35  ;;  %851 = vmatprep.subr.bf16.mxu0 %v1611_v36  ;;  %v1692_v35 = vld [vmem:[#allocation3 + $0x360] ss:$8 sps:$4 sm:$0xff]   ;;  %v1742_v5 = vld [vmem:[#allocation3 + $0x3e4] ss:$8 sps:$4 sm:$0xff]  }
  0x36   :  { %892 = vmatprep.subr.bf16.mxu1 %v1613_v37  ;;  %v54_v36 = vld [vmem:[%s1978_s0 + $0x28] sm:$0xff]  ;;  %v1697_v37 = vld [vmem:[#allocation3 + $0x274] ss:$8 sps:$4 sm:$0xff]  }
  0x38   :  { %852 = vmatpush1.bf16.msra.mxu0 %v1615_v38  ;;  %v1700_v38 = vld [vmem:[#allocation3 + $0x374] ss:$8 sps:$4 sm:$0xff]  }
  0x39   :  { %893 = vmatpush1.bf16.msra.mxu1 %v1616_v39  ;;  %853 = vmatprep.subr.bf16.mxu0 %v1617_v40  ;;  %v62_v39 = vpack.c.bf16 %v54_v36, %v54_v36  ;;  %v56_v40 = vld [vmem:[%s1978_s0 + $0x38] sm:$0xff] }
  0x3a   :  { %894 = vmatprep.subr.bf16.mxu1 %v1619_v41  ;;  %v64_v41 = vpack.c.bf16 %v56_v40, %v56_v40 }
  0x3c   :  { %854 = vmatpush1.bf16.msra.mxu0 %v1621_v42  ;;  %v1695_v42 = vld [vmem:[#allocation3 + $0x270] ss:$8 sps:$4 sm:$0xff]  }
  0x3d   :  { %895 = vmatpush1.bf16.msra.mxu1 %v1622_v43  ;;  %855 = vmatprep.subr.bf16.mxu0 %v1623_v44  ;;  %v1698_v43 = vld [vmem:[#allocation3 + $0x370] ss:$8 sps:$4 sm:$0xff]   ;;  %v1703_v44 = vld [vmem:[#allocation3 + $0x284] ss:$8 sps:$4 sm:$0xff]  }
  0x3e   :  { %896 = vmatprep.subr.bf16.mxu1 %v1625_v45  ;;  %v1706_v45 = vld [vmem:[#allocation3 + $0x384] ss:$8 sps:$4 sm:$0xff]  }
  0x40   :  { %856 = vmatpush1.bf16.msra.mxu0 %v1627_v47  ;;  %v1704_v47 = vld [vmem:[#allocation3 + $0x380] ss:$8 sps:$4 sm:$0xff]  }
  0x41   :  { %897 = vmatpush1.bf16.msra.mxu1 %v1628_v48  ;;  %857 = vmatprep.subr.bf16.mxu0 %v1629_v51  ;;  %v1709_v48 = vld [vmem:[#allocation3 + $0x294] ss:$8 sps:$4 sm:$0xff]   ;;  %v1710_v51 = vld [vmem:[#allocation3 + $0x390] ss:$8 sps:$4 sm:$0xff]  }
  0x42   :  { %898 = vmatprep.subr.bf16.mxu1 %v1631_v53  ;;  %v1718_v53 = vld [vmem:[#allocation3 + $0x3a4] ss:$8 sps:$4 sm:$0xff]  }
  0x44   :  { %858 = vmatpush1.bf16.msra.mxu0 %v1633_v54  ;;  %v1713_v54 = vld [vmem:[#allocation3 + $0x2a0] ss:$8 sps:$4 sm:$0xff]  }
  0x45   :  { %899 = vmatpush1.bf16.msra.mxu1 %v1634_v55  ;;  %859 = vmatprep.subr.bf16.mxu0 %v1635_v56  ;;  %v1716_v55 = vld [vmem:[#allocation3 + $0x3a0] ss:$8 sps:$4 sm:$0xff]   ;;  %v1721_v56 = vld [vmem:[#allocation3 + $0x2b4] ss:$8 sps:$4 sm:$0xff]  }
  0x46   :  { %900 = vmatprep.subr.bf16.mxu1 %v1637_v57  ;;  %v1724_v57 = vld [vmem:[#allocation3 + $0x3b4] ss:$8 sps:$4 sm:$0xff]  }
  0x48   :  { %860 = vmatpush1.bf16.msra.mxu0 %v1639_v58  ;;  %v1719_v58 = vld [vmem:[#allocation3 + $0x2b0] ss:$8 sps:$4 sm:$0xff]  }
  0x49   :  { %901 = vmatpush1.bf16.msra.mxu1 %v1640_v59  ;;  %861 = vmatprep.subr.bf16.mxu0 %v1641_v60  ;;  %v1722_v59 = vld [vmem:[#allocation3 + $0x3b0] ss:$8 sps:$4 sm:$0xff]   ;;  %v1727_v60 = vld [vmem:[#allocation3 + $0x2c4] ss:$8 sps:$4 sm:$0xff]  }
  0x4a   :  { %902 = vmatprep.subr.bf16.mxu1 %v1643_v61  ;;  %v1730_v61 = vld [vmem:[#allocation3 + $0x3c4] ss:$8 sps:$4 sm:$0xff]  }
  0x4c   :  { %862 = vmatpush1.bf16.msra.mxu0 %v1645_v62  ;;  %v1725_v62 = vld [vmem:[#allocation3 + $0x2c0] ss:$8 sps:$4 sm:$0xff]  }
  0x4d   :  { %903 = vmatpush1.bf16.msra.mxu1 %v1646_v63  ;;  %863 = vmatprep.subr.bf16.mxu0 %v1647_v0  ;;  %v1728_v63 = vld [vmem:[#allocation3 + $0x3c0] ss:$8 sps:$4 sm:$0xff]   ;;  %v1733_v0 = vld [vmem:[#allocation3 + $0x2d4] ss:$8 sps:$4 sm:$0xff]  }
  0x4e   :  { %904 = vmatprep.subr.bf16.mxu1 %v1649_v1  ;;  %v1736_v1 = vld [vmem:[#allocation3 + $0x3d4] ss:$8 sps:$4 sm:$0xff]  }
  0x50   :  { %864 = vmatpush1.bf16.msra.mxu0 %v1651_v2  ;;  %v1731_v2 = vld [vmem:[#allocation3 + $0x2d0] ss:$8 sps:$4 sm:$0xff]  }
  0x51   :  { %905 = vmatpush1.bf16.msra.mxu1 %v1652_v3  ;;  %915 = vmatprep.subr.bf16.mxu0 %v1655_v6  ;;  %v1734_v3 = vld [vmem:[#allocation3 + $0x3d0] ss:$8 sps:$4 sm:$0xff]   ;;  %v1737_v6 = vld [vmem:[#allocation3 + $0x2e0] ss:$8 sps:$4 sm:$0xff]  }
  0x52   :  { %956 = vmatprep.subr.bf16.mxu1 %v1658_v7  ;;  %v1740_v7 = vld [vmem:[#allocation3 + $0x3e0] ss:$8 sps:$4 sm:$0xff]  }
  0x53   :  { %866 = vmatmul.mubr.bf16.vlgmr.msra.gmra.mrb[0].mxu0 %v57_v8  ;;  %v1745_v8 = vld [vmem:[#allocation3 + $0x2f4] ss:$8 sps:$4 sm:$0xff]  }
  0x54   :  { %907 = vmatmul.mubr.bf16.vlgmr.msra.gmra.mrb[0].mxu1 %v59_v9  ;;  %916 = vmatpush1.bf16.msra.mxu0 %v1653_v10  ;;  %v1748_v9 = vld [vmem:[#allocation3 + $0x3f4] ss:$8 sps:$4 sm:$0xff]   ;;  %v1743_v10 = vld [vmem:[#allocation3 + $0x2f0] ss:$8 sps:$4 sm:$0xff]  }
  0x55   :  { %957 = vmatpush1.bf16.msra.mxu1 %v1656_v11  ;;  %917 = vmatprep.subr.bf16.mxu0 %v1661_v12  ;;  %v1746_v11 = vld [vmem:[#allocation3 + $0x3f0] ss:$8 sps:$4 sm:$0xff]   ;;  %v53_v12 = vld [vmem:[%s1978_s0 + $0x20] sm:$0xff] }
  0x56   :  { %958 = vmatprep.subr.bf16.mxu1 %v1664_v13  ;;  %947 = vmatprep.mubr.bf16.mxu0 %v62_v39  ;;  %v55_v13 = vld [vmem:[%s1978_s0 + $0x30] sm:$0xff] }
  0x57   :  { %988 = vmatprep.mubr.bf16.mxu1 %v64_v41 }
  0x58   :  { %918 = vmatpush1.bf16.msra.mxu0 %v1659_v14  ;;  %v61_v14 = vpack.c.bf16 %v53_v12, %v53_v12  ;;  %v1814_v12 = vmov 0.0  }
  0x59   :  { %959 = vmatpush1.bf16.msra.mxu1 %v1662_v15  ;;  %919 = vmatprep.subr.bf16.mxu0 %v1667_v16  ;;  %v63_v15 = vpack.c.bf16 %v55_v13, %v55_v13  ;;  %v1749_v16 = vld [vmem:[%s1981_s3 + $0x40] sm:$0xff]   ;;  %v1766_v13 = vld [vmem:[%s1983_s5 + $0x8] sm:$0xff]  }
  0x5a   :  { %960 = vmatprep.subr.bf16.mxu1 %v1670_v17  ;;  %v1750_v17 = vld [vmem:[%s1981_s3] sm:$0xff]  }
  0x5c   :  { %920 = vmatpush1.bf16.msra.mxu0 %v1665_v18  ;;  %v1751_v18 = vld [vmem:[%s1981_s3 + $0x48] sm:$0xff]  }
  0x5d   :  { %961 = vmatpush1.bf16.msra.mxu1 %v1668_v19  ;;  %921 = vmatprep.subr.bf16.mxu0 %v1673_v20  ;;  %v1752_v19 = vld [vmem:[%s1981_s3 + $0x8] sm:$0xff]   ;;  %v1753_v20 = vld [vmem:[%s1981_s3 + $0x50] sm:$0xff]  }
  0x5e   :  { %962 = vmatprep.subr.bf16.mxu1 %v1676_v21  ;;  %v1754_v21 = vld [vmem:[%s1981_s3 + $0x10] sm:$0xff]  }
  0x60   :  { %922 = vmatpush1.bf16.msra.mxu0 %v1671_v22  ;;  %v1755_v22 = vld [vmem:[%s1981_s3 + $0x58] sm:$0xff]  }
  0x61   :  { %963 = vmatpush1.bf16.msra.mxu1 %v1674_v23  ;;  %923 = vmatprep.subr.bf16.mxu0 %v1679_v24  ;;  %v1756_v23 = vld [vmem:[%s1981_s3 + $0x18] sm:$0xff]   ;;  %v1757_v24 = vld [vmem:[%s1981_s3 + $0x60] sm:$0xff]  }
  0x62   :  { %964 = vmatprep.subr.bf16.mxu1 %v1682_v25  ;;  %v1758_v25 = vld [vmem:[%s1981_s3 + $0x20] sm:$0xff]  }
  0x64   :  { %924 = vmatpush1.bf16.msra.mxu0 %v1677_v26  ;;  %v1759_v26 = vld [vmem:[%s1981_s3 + $0x68] sm:$0xff]  }
  0x65   :  { %965 = vmatpush1.bf16.msra.mxu1 %v1680_v27  ;;  %925 = vmatprep.subr.bf16.mxu0 %v1685_v28  ;;  %v1760_v27 = vld [vmem:[%s1981_s3 + $0x28] sm:$0xff]   ;;  %v1761_v28 = vld [vmem:[%s1981_s3 + $0x70] sm:$0xff]  }
  0x66   :  { %966 = vmatprep.subr.bf16.mxu1 %v1688_v29  ;;  %v1762_v29 = vld [vmem:[%s1981_s3 + $0x30] sm:$0xff]  }
  0x68   :  { %926 = vmatpush1.bf16.msra.mxu0 %v1683_v30  ;;  %v1763_v30 = vld [vmem:[%s1981_s3 + $0x78] sm:$0xff]  }
  0x69   :  { %967 = vmatpush1.bf16.msra.mxu1 %v1686_v31  ;;  %927 = vmatprep.subr.bf16.mxu0 %v1691_v32  ;;  %v1764_v31 = vld [vmem:[%s1981_s3 + $0x38] sm:$0xff]  }
  0x6a   :  { %968 = vmatprep.subr.bf16.mxu1 %v1694_v33 }
  0x6c   :  { %928 = vmatpush1.bf16.msra.mxu0 %v1689_v34 }
  0x6d   :  { %969 = vmatpush1.bf16.msra.mxu1 %v1692_v35  ;;  %929 = vmatprep.subr.bf16.mxu0 %v1697_v37 }
  0x6e   :  { %970 = vmatprep.subr.bf16.mxu1 %v1700_v38 }
  0x70   :  { %930 = vmatpush1.bf16.msra.mxu0 %v1695_v42  ;;  %v1008_v42 = vlaneseq }
  0x71   :  { %971 = vmatpush1.bf16.msra.mxu1 %v1698_v43  ;;  %931 = vmatprep.subr.bf16.mxu0 %v1703_v44 }
  0x72   :  { %972 = vmatprep.subr.bf16.mxu1 %v1706_v45  ;;  %v1009_v43 = vshrl.u32 %v1008_v42, 7  ;;  %v1006_v45 = vld [vmem:[%s1980_s2] sm:$0x3] }
  0x74   :  { %932 = vmatpush1.bf16.msra.mxu0 %v1701_v46  ;;  %v1010_v44 = vsub.s32 0, %v1009_v43  ;;  %v1014_v46 = vsub.s32 1, %v1009_v43 }
  0x75   :  { %973 = vmatpush1.bf16.msra.mxu1 %v1704_v47  ;;  %933 = vmatprep.subr.bf16.mxu0 %v1709_v48 }
  0x76   :  { %974 = vmatprep.subr.bf16.mxu1 %v1712_v49 }
  0x78   :  { %934 = vmatpush1.bf16.msra.mxu0 %v1707_v50  ;;  %v1011_v50 = vrot.slane %v1006_v45, %v1010_v44 }
  0x79   :  { %975 = vmatpush1.bf16.msra.mxu1 %v1710_v51  ;;  %935 = vmatprep.subr.bf16.mxu0 %v1715_v52 }
  0x7a   :  { %976 = vmatprep.subr.bf16.mxu1 %v1718_v53 }
  0x7c   :  { %936 = vmatpush1.bf16.msra.mxu0 %v1713_v54  ;;  %v1015_v54 = vrot.slane %v1006_v45, %v1014_v46 }
  0x7d   :  { %977 = vmatpush1.bf16.msra.mxu1 %v1716_v55  ;;  %937 = vmatprep.subr.bf16.mxu0 %v1721_v56 }
  0x7e   :  { %978 = vmatprep.subr.bf16.mxu1 %v1724_v57 }
  0x80   :  { %938 = vmatpush1.bf16.msra.mxu0 %v1719_v58 }
  0x81   :  { %979 = vmatpush1.bf16.msra.mxu1 %v1722_v59  ;;  %939 = vmatprep.subr.bf16.mxu0 %v1727_v60 }
  0x82   :  { %980 = vmatprep.subr.bf16.mxu1 %v1730_v61 }
  0x84   :  { %940 = vmatpush1.bf16.msra.mxu0 %v1725_v62 }
  0x85   :  { %981 = vmatpush1.bf16.msra.mxu1 %v1728_v63  ;;  %941 = vmatprep.subr.bf16.mxu0 %v1733_v0 }
  0x86   :  { %982 = vmatprep.subr.bf16.mxu1 %v1736_v1 }
  0x88   :  { %942 = vmatpush1.bf16.msra.mxu0 %v1731_v2 }
  0x89   :  { %983 = vmatpush1.bf16.msra.mxu1 %v1734_v3  ;;  %943 = vmatprep.subr.bf16.mxu0 %v1739_v4 }
  0x8a   :  { %984 = vmatprep.subr.bf16.mxu1 %v1742_v5 }
  0x8c   :  { %944 = vmatpush1.bf16.msra.mxu0 %v1737_v6 }
  0x8d   :  { %985 = vmatpush1.bf16.msra.mxu1 %v1740_v7  ;;  %945 = vmatprep.subr.bf16.mxu0 %v1745_v8 }
  0x8e   :  { %986 = vmatprep.subr.bf16.mxu1 %v1748_v9 }
  0x90   :  { %946 = vmatpush1.bf16.msra.mxu0 %v1743_v10 }
  0x91   :  { %987 = vmatpush1.bf16.msra.mxu1 %v1746_v11  ;;  %1501 = vmatprep.subr.bf16.mxu0 %v1749_v16  ;;  %v1765_v11 = vld [vmem:[%s1983_s5] sm:$0xff]  }
  0x92   :  { %1532 = vmatprep.subr.bf16.mxu1 %v1814_v12  ;;  %v1769_v16 = vld [vmem:[%s1983_s5 + $0x20] sm:$0xff]  }
  0x93   :  { %948 = vmatmul.mubr.bf16.vlgmr.msra.gmra.mrb[4].mxu0 %v61_v14  ;;  %v1767_v14 = vld [vmem:[%s1983_s5 + $0x10] sm:$0xff]  }
  0x94   :  { %989 = vmatmul.mubr.bf16.vlgmr.msra.gmra.mrb[4].mxu1 %v63_v15  ;;  %1502 = vmatpush3.bf16.msra.mxu0 %v1750_v17  ;;  %v1768_v15 = vld [vmem:[%s1983_s5 + $0x18] sm:$0xff]   ;;  %v1770_v17 = vld [vmem:[%s1983_s5 + $0x28] sm:$0xff]  }
  0x95   :  { %1503 = vmatprep.subr.bf16.mxu0 %v1751_v18  ;;  %1533 = vmatpush3.bf16.msra.mxu1 %v1765_v11  ;;  %v1771_v18 = vld [vmem:[%s1983_s5 + $0x30] sm:$0xff]  }
  0x96   :  { %1534 = vmatprep.subr.bf16.mxu1 %v1814_v12  ;;  %1548 = vmatprep.mubr.msk.bf16.mxu1 %vm1815_vm0, %v1814_v12 }
  0x98   :  { %1504 = vmatpush3.bf16.msra.mxu0 %v1752_v19  ;;  %v1772_v19 = vld [vmem:[%s1983_s5 + $0x38] sm:$0xff]  }
  0x99   :  { %1505 = vmatprep.subr.bf16.mxu0 %v1753_v20  ;;  %1535 = vmatpush3.bf16.msra.mxu1 %v1766_v13 }
  0x9a   :  { %1536 = vmatprep.subr.bf16.mxu1 %v1814_v12 }
  0x9c   :  { %1506 = vmatpush3.bf16.msra.mxu0 %v1754_v21  ;;  %v1474_v21 = vld [vmem:[%s1982_s4] ss:$0 sm:$0xff] }
  0x9d   :  { %1507 = vmatprep.subr.bf16.mxu0 %v1755_v22  ;;  %1537 = vmatpush3.bf16.msra.mxu1 %v1767_v14 }
  0x9e   :  { %1538 = vmatprep.subr.bf16.mxu1 %v1814_v12 }
  0xa0   :  { %1508 = vmatpush3.bf16.msra.mxu0 %v1756_v23 }
  0xa1   :  { %1509 = vmatprep.subr.bf16.mxu0 %v1757_v24  ;;  %1539 = vmatpush3.bf16.msra.mxu1 %v1768_v15 }
  0xa2   :  { %1540 = vmatprep.subr.bf16.mxu1 %v1814_v12 }
  0xa4   :  { %1510 = vmatpush3.bf16.msra.mxu0 %v1758_v25 }
  0xa5   :  { %1511 = vmatprep.subr.bf16.mxu0 %v1759_v26  ;;  %1541 = vmatpush3.bf16.msra.mxu1 %v1769_v16 }
  0xa6   :  { %1542 = vmatprep.subr.bf16.mxu1 %v1814_v12 }
  0xa8   :  { %1512 = vmatpush3.bf16.msra.mxu0 %v1760_v27 }
  0xa9   :  { %1513 = vmatprep.subr.bf16.mxu0 %v1761_v28  ;;  %1543 = vmatpush3.bf16.msra.mxu1 %v1770_v17 }
  0xaa   :  { %1544 = vmatprep.subr.bf16.mxu1 %v1814_v12 }
  0xac   :  { %1514 = vmatpush3.bf16.msra.mxu0 %v1762_v29 }
  0xad   :  { %1515 = vmatprep.subr.bf16.mxu0 %v1763_v30  ;;  %1545 = vmatpush3.bf16.msra.mxu1 %v1771_v18 }
  0xae   :  { %1546 = vmatprep.subr.bf16.mxu1 %v1814_v12 }
  0xb0   :  { %1516 = vmatpush3.bf16.msra.mxu0 %v1764_v31 }
  0xb1   :  { %1547 = vmatpush3.bf16.msra.mxu1 %v1772_v19 }
 0x126   :  { %v867_v32 = vpop.f32.mrb[0].mxu0 }
 0x127   :  { %v908_v33 = vpop.f32.mrb[0].mxu1  ;;  %v869_v35 = vpop.f32.mrb[1].mxu0 }
 0x128   :  { %v909_v34 = vadd.f32 %v908_v33, %v867_v32  ;;  %v910_v36 = vpop.f32.mrb[1].mxu1  ;;  %v871_v38 = vpop.f32.mrb[2].mxu0  ;;  %v1331_v33 = vand.u32 127, %v1008_v42 }
 0x129   :  { %v911_v37 = vadd.f32 %v910_v36, %v869_v35  ;;  %v912_v39 = vpop.f32.mrb[2].mxu1  ;;  %v872_v40 = vpop.f32.mrb[3].mxu0 }
 0x12a   :  { %v913_v41 = vpop.f32.mrb[3].mxu1  ;;  %vm1332_vm1 = vcmp.ge.s32.totalorder %v1331_v33, 8 }
 0x166   :  { %v949_v47 = vpop.f32.mrb[4].mxu0 }
 0x167   :  { %v990_v48 = vpop.f32.mrb[4].mxu1  ;;  %v950_v49 = vadd.f32 %v949_v47, %v909_v34  ;;  %v951_v51 = vpop.f32.mrb[5].mxu0  ;;  %v1492_v34 = vld [vmem:[%s1984_s6] ss:$0 sm:$0xff] }
 0x168   :  { %v992_v52 = vpop.f32.mrb[5].mxu1  ;;  %v952_v53 = vadd.f32 %v951_v51, %v911_v37  ;;  %v953_v55 = vpop.f32.mrb[6].mxu0 }
 0x169   :  { %v994_v56 = vpop.f32.mrb[6].mxu1  ;;  %v991_v57 = vadd.f32 %v990_v48, %v950_v49  ;;  %v954_v58 = vpop.f32.mrb[7].mxu0 }
 0x16a   :  { %v995_v59 = vpop.f32.mrb[7].mxu1  ;;  %v993_v60 = vadd.f32 %v992_v52, %v952_v53 }
 0x16b   :  { %v1018_v61 = vadd.f32 %v1011_v50, %v991_v57 }
 0x16c   :  { %v1019_v62 = vadd.f32 %v1015_v54, %v993_v60 }
 0x16d   :  { %v1472_v63 = vmul.f32 -1.442695, %v1018_v61 }
 0x16e   :  { %v1473_v0 = vmul.f32 -1.442695, %v1019_v62 }
 0x16f   :  { %1773 = vpow2.f32 %v1472_v63 }
 0x170   :  { %1775 = vpow2.f32 %v1473_v0 }
 0x179   :  { %v1774_v1 = vpop.eup %1773 }
 0x17a   :  { %v1776_v2 = vpop.eup %1775  ;;  %v1026_v3 = vadd.f32 1.0, %v1774_v1 }
 0x17b   :  { %v1027_v4 = vadd.f32 1.0, %v1776_v2 }
 0x17c   :  { %1777 = vrcp.f32 %v1026_v3 }
 0x17d   :  { %1779 = vrcp.f32 %v1027_v4 }
 0x186   :  { %v1778_v5 = vpop.eup %1777 }
 0x187   :  { %v1780_v6 = vpop.eup %1779  ;;  %v1032_v7 = vmul.f32 %v1778_v5, %v1018_v61 }
 0x188   :  { %v1033_v8 = vmul.f32 %v1780_v6, %v1019_v62 }
 0x189   :  { %v1034_v10 = vpack.c.bf16 %v1032_v7, %v1032_v7 }
 0x18a   :  { %v1035_v9 = vpack.c.bf16 %v1033_v8, %v1033_v8 }
 0x18c   :  { %1203 = vmatprep.mubr.bf16.mxu0 %v1035_v9 }
 0x18d   :  { %1204 = vmatmul.mubr.bf16.vlgmr.msra.gmra.mrb[8].mxu0 %v1034_v10 }
 0x260   :  { %v1517_v20 = vpop.f32.mrb[8].mxu0 }
 0x261   :  { %v1518_v22 = vpop.f32.mrb[9].mxu0 }
 0x262   :  { %v1519_v23 = vadd.f32 %v1518_v22, %v1517_v20  ;;  %v1520_v24 = vpop.f32.mrb[10].mxu0 }
 0x263   :  { %v1521_v25 = vpop.f32.mrb[11].mxu0 }
 0x264   :  { %v1206_v26 = vadd.f32 %v1519_v23, %v1474_v21 }
 0x266   :  { %v1491_v27 = vmul.f32 -1.442695, %v1206_v26 }
 0x268   :  { %1781 = vpow2.f32 %v1491_v27 }
 0x272   :  { %v1782_v28 = vpop.eup %1781 }
 0x273   :  { %v1214_v29 = vadd.f32 1.0, %v1782_v28 }
 0x275   :  { %1783 = vrcp.f32 %v1214_v29 }
 0x27f   :  { %v1784_v30 = vpop.eup %1783 }
 0x280   :  { %v1217_v31 = vmul.f32 %v1784_v30, %v1206_v26 }
 0x282   :  { %v1218_v32 = vpack.c.bf16 %v1217_v31, %v1217_v31 }
 0x284   :  { %1549 = vmatmul.mubr.bf16.vlgmr.msra.gmra.mrb[8].mxu1 %v1218_v32 }
 0x357   :  { %v1324_v35 = vpop.f32.mrb[8].mxu1 }
 0x358   :  { %v1325_v36 = vadd.f32 %v1492_v34, %v1324_v35  ;;  %v1550_v37 = vpop.f32.mrb[9].mxu1 }
 0x359   :  { %v1327_v38 = vpop.f32.mrb[10].mxu1 }
 0x35a   :  { %v1333_v39 = vsel %vm1332_vm1, %v1325_v36, 0.0  ;;  %v1551_v40 = vpop.f32.mrb[11].mxu1 }
 0x35b   :  { %v1334_v41 = vmul.f32 1.442695, %v1333_v39 }
 0x35d   :  { %1785 = vpow2.f32 %v1334_v41 }
 0x367   :  { %v1786_v43 = vpop.eup %1785 }
 0x368   :  { %v1336_v44 = vsel %vm1332_vm1, %v1786_v43, %v1325_v36 }
 0x369   :  { %v1337_v45 = vpack.c.bf16 %v1336_v44, %v1336_v44 }
 0x36b   :  { %1338 = vst [vmem:[%s1985_s7] sm:$0xf] %v1337_v45 }
 0x36c   :  { %1343 = vsyncpa [#allocation4], 1 }

</bundles_post_ra>
